<compile_context>
chip_gen: v6e
topology: v6e:2x2x1
jax: 0.10.0
libtpu: 0.0.40
codegen_flags: <defaults>
</compile_context>

<pallas_src>
import jax
import jax.numpy as jnp
import numpy as np
from jax.experimental import pallas as pl
from jax.experimental.pallas import tpu as pltpu


# Above this featureNumb the folded (F^2, F^2) contraction stops being a good idea
# (F^4 memory for C, F/2x extra FLOPs); fall back to the two-stage XLA einsum.
_MAX_FOLD_F = 16


def agg_kernel(cg_ref, inter_ref, feat_ref, out_ref):
    """One grid step = one block of `bb` batch elements, processed G at a time.

    cg_ref:    [G*F*F, G*F*F] block-diagonal folded weights (compute dtype)
    inter_ref: [bb, F*F, E]   interaction with (k, m) flattened k-major (stored dtype)
    feat_ref:  [bb, F, E]     feature (stored dtype)
    out_ref:   [bb, F, F, E]  output
    """
    bb, ff, e = inter_ref.shape
    f = feat_ref.shape[1]
    gsz = cg_ref.shape[0] // ff          # batch elements folded into one MXU dot
    n_groups = bb // gsz
    compute_dtype = cg_ref.dtype

    def body(gi, carry):
        base = pl.multiple_of(gi * gsz, gsz)
        # [G, F*F, E] -> [G*F*F, E] merges leading dims: layout-free.  The cast to
        # the MXU compute dtype rides the (idle) VPU slots under the DMA.
        x = inter_ref[pl.ds(base, gsz)].astype(compute_dtype).reshape(gsz * ff, e)
        # One full-width (256,256)@(256,128) MXU dot covers G batch elements
        # (block-diagonal C_G), f32 accumulation.  C_G is read inside the loop so
        # it streams from VMEM instead of pinning 32 vregs across the whole loop.
        y = jnp.dot(cg_ref[...], x, preferred_element_type=jnp.float32)
        y = y.reshape(gsz, f, f, e)                              # [G, i, j, E]
        gate = feat_ref[pl.ds(base, gsz)].astype(jnp.float32)    # [G, j, E]
        # feature[b, j, e] broadcasts along i; the store is lane-dense (E = k*128).
        out_ref[pl.ds(base, gsz)] = (y * gate[:, None, :, :]).astype(out_ref.dtype)
        return carry

    # unroll=1: each in-flight iteration already holds ~48 vregs; more unrolling
    # spills, and the loop is hidden under the per-step HBM DMA anyway (review #7).
    jax.lax.fori_loop(0, n_groups, body, 0, unroll=1)


def _round_up(x, m):
    return ((x + m - 1) // m) * m


def _vmem_capacity_bytes():
    try:
        cap = int(pltpu.get_tpu_info().vmem_capacity_bytes)
    except Exception:
        cap = 64 << 20                       # conservative fallback: v7x physical VMEM
    return max(cap, 32 << 20)


def _choose_block_b(batch, group, per_elem_bytes, stream_budget_bytes):
    """Largest batch block (multiple of `group`) whose double-buffered streamed
    tiles fit `stream_budget_bytes`.  Large batches are trimmed so the pipeline
    (and both v7x TensorCores) get several grid steps, but a step is never shrunk
    below ~4 MiB of streamed data (small-tile DMA regime is a 2-3x cliff)."""
    cap = max(group, (stream_budget_bytes // (2 * per_elem_bytes)) // group * group)
    bb = min(cap, _round_up(batch, group))
    min_elems = max(group,
                    _round_up(((4 << 20) + per_elem_bytes - 1) // per_elem_bytes, group))
    for steps in (4, 2):
        if batch >= steps * group:
            target = max(group, _round_up((batch + steps - 1) // steps, group))
            if target >= min_elems:
                return min(bb, target)
    return bb


def aggregation_forward(interaction, feature, weight_a, weight_b, *,
                        block_b=None, group_b=4,
                        compute_dtype=jnp.bfloat16, out_dtype=None):
    """Pallas forward of AggregationLayer.

    interaction: [B, F, F, E], feature: [B, F, E], weight_a/b: [F, F].
    Returns [B, F, F, E] in `out_dtype` (default: interaction.dtype).

    compute_dtype: MXU operand dtype (bf16 default; jnp.float32 gives exact f32
      numerics at ~3-4x MXU cost, still hidden under HBM traffic on all gens).
    out_dtype: pass jnp.bfloat16 to halve output-side HBM traffic (~1.4-1.6x on this
      bandwidth-bound kernel) when downstream tolerates it.
    group_b: batch elements folded into each block-diagonal MXU dot (4 fills the
      256-row MXU on v6e/v7x; 2 matches v5e's 128-wide arrays).
    """
    B, F, F2, E = interaction.shape
    assert F == F2, "interaction must be [B, F, F, E]"
    assert weight_a.shape == (F, F) and weight_b.shape == (F, F)
    assert feature.shape == (B, F, E)

    if F > _MAX_FOLD_F:
        # Folded C is (F^2, F^2): F^4 memory and F/2x extra FLOPs would turn this
        # memory-bound kernel compute-bound.
        # TODO(synk): in-kernel two-stage path (B-contraction, sublane transpose,
        # A-contraction) for large F; fall back to XLA's two-stage einsum for now.
        return aggregation_reference(interaction, feature, weight_a, weight_b)

    out_dtype = interaction.dtype if out_dtype is None else np.dtype(out_dtype)
    G = max(1, int(group_b))

    # Bytes of VMEM streamed per batch element (input tiles + output tile).
    per_elem = (F * F * E * interaction.dtype.itemsize
                + F * E * feature.dtype.itemsize
                + F * F * E * np.dtype(out_dtype).itemsize)
    cg_bytes = (G * F * F) ** 2 * np.dtype(compute_dtype).itemsize

    vmem_cap = _vmem_capacity_bytes()
    # Double-buffered streamed tiles get at most half the physical VMEM (capped at
    # 48 MiB on 128 MiB v5e/v6e parts), minus headroom for the C_G double buffer and
    # Mosaic internal scratch.
    stream_budget = max(2 << 20, min(vmem_cap // 2, 48 << 20) - (6 << 20))

    if block_b is None:
        bb = _choose_block_b(B, G, per_elem, stream_budget)
    else:
        bb = int(block_b)
        assert bb > 0 and bb % G == 0, \
            f"block_b={bb} must be a positive multiple of group_b={G}"
    B_pad = _round_up(max(B, bb), bb)
    n_blocks = B_pad // bb

    need = 2 * bb * per_elem + 2 * cg_bytes
    vmem_limit = int(min(max(need + (8 << 20), 32 << 20), vmem_cap))

    # Wrapper-side glue (tiny): fold the weights and replicate on the block diagonal.
    # C[(i*F+j),(k*F+m)] = A[i,m]*B[j,k];  C_G = kron(I_G, C).
    C = jnp.einsum('im,jk->ijkm', weight_a, weight_b).reshape(F * F, F * F)
    CG = jnp.kron(jnp.eye(G, dtype=C.dtype), C).astype(compute_dtype)

    # (B, F, F, E) -> (B, F*F, E) merges adjacent dims: layout-free, no HBM pass.
    # No wrapper-side dtype cast (review #5): the kernel casts per-tile instead.
    inter_flat = interaction.reshape(B, F * F, E)
    feat = feature
    if B_pad != B:
        # Pad up to a block multiple instead of shrinking the block (review #10);
        # padded rows are zeros -> padded outputs are zeros, sliced off below.
        inter_flat = jnp.pad(inter_flat, ((0, B_pad - B), (0, 0), (0, 0)))
        feat = jnp.pad(feat, ((0, B_pad - B), (0, 0), (0, 0)))

    out = pl.pallas_call(
        agg_kernel,
        out_shape=jax.ShapeDtypeStruct((B_pad, F, F, E), out_dtype),
        grid_spec=pltpu.PrefetchScalarGridSpec(
            num_scalar_prefetch=0,
            grid=(n_blocks,),
            in_specs=[
                # Constant block index -> the auto-pipeliner DMAs C_G once per core.
                # At F=8, G=4 its 2x128 KiB (bf16) double buffer is noise;
                # pipeline_mode=pl.Buffered(1) would reclaim the 2nd buffer if F grows.
                pl.BlockSpec((G * F * F, G * F * F), lambda g: (0, 0)),
                pl.BlockSpec((bb, F * F, E), lambda g: (g, 0, 0)),
                pl.BlockSpec((bb, F, E), lambda g: (g, 0, 0)),
            ],
            out_specs=pl.BlockSpec((bb, F, F, E), lambda g: (g, 0, 0, 0)),
        ),
        compiler_params=pltpu.CompilerParams(
            dimension_semantics=("parallel",),
            vmem_limit_bytes=vmem_limit),
    )(CG, inter_flat, feat)

    return out if B_pad == B else out[:B]


def aggregation_reference(interaction, feature, weight_a, weight_b):
    """Pure-JAX transcription of the PyTorch forward (f32, highest precision)."""
    left = jnp.einsum('im,bkme->bkie', weight_a, interaction, precision='highest')
    mid = jnp.transpose(left, (0, 2, 1, 3))
    right = jnp.einsum('jk,bike->bije', weight_b, mid, precision='highest')
    return right * feature[:, None, :, :]


if __name__ == "__main__":
    B, F, E = 20, 8, 128   # batch, featureNumb, embedSize

    key = jax.random.PRNGKey(0)
    k1, k2, k3, k4 = jax.random.split(key, 4)
    # nn.init.normal(std=0.01) equivalents, deterministic.
    weight_a = 0.01 * jax.random.normal(k1, (F, F), jnp.float32)
    weight_b = 0.01 * jax.random.normal(k2, (F, F), jnp.float32)
    interaction = jax.random.normal(k3, (B, F, F, E), jnp.float32)
    feature = jax.random.normal(k4, (B, F, E), jnp.float32)

    ref = aggregation_reference(interaction, feature, weight_a, weight_b)

    fwd = jax.jit(aggregation_forward,
                  static_argnames=("block_b", "group_b", "compute_dtype", "out_dtype"))

    # 1) default config: generation-aware block size (single block at this batch).
    out = jax.block_until_ready(fwd(interaction, feature, weight_a, weight_b))
    # 2) small explicit block: exercises the multi-block grid + padded-tail path.
    out_small = jax.block_until_ready(
        fwd(interaction, feature, weight_a, weight_b, block_b=8))

    for o in (out, out_small):
        assert o.shape == (B, F, F, E) and o.dtype == interaction.dtype
        # Tolerances sized for the bf16 quantization of C_G / interaction
        # (accumulation and the feature gate are f32).
        np.testing.assert_allclose(np.asarray(o, dtype=np.float32),
                                   np.asarray(ref, dtype=np.float32),
                                   rtol=2e-2, atol=5e-4)
    print("KERNEL_OK")
</pallas_src>

<mosaic_0001>
module attributes {stable_mosaic.version = 11 : i64} {
  func.func @agg_kernel(%arg0: i32, %arg1: memref<256x256xbf16, #tpu.memory_space<vmem>>, %arg2: memref<20x64x128xf32, #tpu.memory_space<vmem>>, %arg3: memref<20x8x128xf32, #tpu.memory_space<vmem>>, %arg4: memref<20x8x8x128xf32, #tpu.memory_space<vmem>>) attributes {dimension_semantics = [#tpu.dimension_semantics<parallel>], iteration_bounds = array<i64: 1>, scalar_prefetch = 0 : i64, scratch_operands = 0 : i64, tpu.core_type = #tpu.core_type<tc>, window_params = [{pipeline_mode = #tpu.pipeline_mode<synchronous>, transform_indices = @transform_0, window_bounds = array<i64: 256, 256>}, {transform_indices = @transform_1, window_bounds = array<i64: 20, 64, 128>}, {transform_indices = @transform_2, window_bounds = array<i64: 20, 8, 128>}, {transform_indices = @transform_3, window_bounds = array<i64: 20, 8, 8, 128>}]} {
    %c0_i32 = arith.constant 0 : i32
    %c5_i32 = arith.constant 5 : i32
    %0 = arith.addi %c0_i32, %c5_i32 : i32
    %c1_i32 = arith.constant 1 : i32
    scf.for %arg5 = %c0_i32 to %0 step %c1_i32  : i32 {
      %c4_i32 = arith.constant 4 : i32
      %1 = arith.muli %arg5, %c4_i32 : i32
      %2 = tpu.assume_multiple %1, 4 : i32
      %3 = arith.index_cast %2 : i32 to index
      %c0 = arith.constant 0 : index
      %c0_1 = arith.constant 0 : index
      %4 = vector.load %arg2[%3, %c0, %c0_1] : memref<20x64x128xf32, #tpu.memory_space<vmem>>, vector<4x64x128xf32>
      %5 = arith.truncf %4 : vector<4x64x128xf32> to vector<4x64x128xbf16>
      %6 = vector.shape_cast %5 : vector<4x64x128xbf16> to vector<256x128xbf16>
      %c0_2 = arith.constant 0 : index
      %c0_3 = arith.constant 0 : index
      %7 = vector.load %arg1[%c0_2, %c0_3] : memref<256x256xbf16, #tpu.memory_space<vmem>>, vector<256x256xbf16>
      %cst = arith.constant dense<0.000000e+00> : vector<256x128xf32>
      %8 = tpu.matmul %7, %6, %cst {dimension_numbers = #tpu.dot_dimension_numbers<[1], [0], [0], [1], [0, 0, 1, 1], [], []>} : vector<256x256xbf16>, vector<256x128xbf16>, vector<256x128xf32> -> vector<256x128xf32>
      %9 = vector.shape_cast %8 : vector<256x128xf32> to vector<4x8x8x128xf32>
      %10 = arith.index_cast %2 : i32 to index
      %c0_4 = arith.constant 0 : index
      %c0_5 = arith.constant 0 : index
      %11 = vector.load %arg3[%10, %c0_4, %c0_5] : memref<20x8x128xf32, #tpu.memory_space<vmem>>, vector<4x8x128xf32>
      %12 = vector.shape_cast %11 : vector<4x8x128xf32> to vector<4x1x8x128xf32>
      %13 = vector.broadcast %12 : vector<4x1x8x128xf32> to vector<4x8x8x128xf32>
      %14 = arith.mulf %9, %13 : vector<4x8x8x128xf32>
      %15 = arith.index_cast %2 : i32 to index
      %c0_6 = arith.constant 0 : index
      %c0_7 = arith.constant 0 : index
      %c0_8 = arith.constant 0 : index
      %16 = vector.load %arg4[%15, %c0_6, %c0_7, %c0_8] : memref<20x8x8x128xf32, #tpu.memory_space<vmem>>, vector<4x8x8x128xf32>
      tpu.vector_store %arg4[%15, %c0_6, %c0_7, %c0_8], %14 {strides = array<i32>} : memref<20x8x8x128xf32, #tpu.memory_space<vmem>>, vector<4x8x8x128xf32>,
    }
    %c5_i32_0 = arith.constant 5 : i32
    return
  }
  func.func @transform_0(%arg0: i32) -> (i32, i32) {
    %c0_i32 = arith.constant 0 : i32
    %c0_i32_0 = arith.constant 0 : i32
    %c0_i32_1 = arith.constant 0 : i32
    return %c0_i32, %c0_i32_0 : i32, i32
  }
  func.func @transform_1(%arg0: i32) -> (i32, i32, i32) {
    %c0_i32 = arith.constant 0 : i32
    %c0_i32_0 = arith.constant 0 : i32
    %c0_i32_1 = arith.constant 0 : i32
    return %arg0, %c0_i32, %c0_i32_0 : i32, i32, i32
  }
  func.func @transform_2(%arg0: i32) -> (i32, i32, i32) {
    %c0_i32 = arith.constant 0 : i32
    %c0_i32_0 = arith.constant 0 : i32
    %c0_i32_1 = arith.constant 0 : i32
    return %arg0, %c0_i32, %c0_i32_0 : i32, i32, i32
  }
  func.func @transform_3(%arg0: i32) -> (i32, i32, i32, i32) {
    %c0_i32 = arith.constant 0 : i32
    %c0_i32_0 = arith.constant 0 : i32
    %c0_i32_1 = arith.constant 0 : i32
    %c0_i32_2 = arith.constant 0 : i32
    return %arg0, %c0_i32, %c0_i32_0, %c0_i32_1 : i32, i32, i32, i32
  }
}

</mosaic_0001>

<bundles_post_ra>
// kernel: mul.4
= control target key start
LH: loop header
LB: loop body
LE: loop exit
PB: predicated region body
PF: predicated region fallthrough
CT: control target
= control target key end

     0   :  { %vm4_vm0 = vcmask 1047556   ;;  %s869_s14 = smov 56   ;;  %s870_s26 = smov 48   ;;  %vm6_vm1 = vcmask 64512   ;;  %vm79_vm2 = vcmask 523712   ;;  %vm166_vm3 = vcmask 458112   ;;  %s1606_s0 = inlined_call_operand.vmem [shape: f32[8,8,8,8], index: 0, kind: input, shape index: {}]   ;;  %s1607_s1 = inlined_call_operand.vmem [shape: f32[64,64], index: 1, kind: output, shape index: {}]  }
   0x1   :  { %v706_v0 = vld [vmem:[%s1606_s0 + $0x47] ss:$8 sm:$0xf]   ;;  %v726_v24 = vld [vmem:[%s1606_s0 + $0x106] ss:$8 sm:$0xf]  }
   0x2   :  { %v707_v1 = vld [vmem:[%s1606_s0 + $0x47] ss:$8 sm:$0xf0]   ;;  %v727_v25 = vld [vmem:[%s1606_s0 + $0x106] ss:$8 sm:$0xf0]  }
   0x3   :  { %v97_v2 = vsel %vm4_vm0, %v707_v1, %v706_v0  ;;  %v701_v3 = vld [vmem:[%s1606_s0 + $0x7] ss:$8 sm:$0xf]   ;;  %v724_v26 = vld [vmem:[%s1606_s0 + $0x6] ss:$8 sm:$0xf]   ;;  %v173_v28 = vsel %vm4_vm0, %v727_v25, %v726_v24 }
   0x4   :  { %v702_v4 = vld [vmem:[%s1606_s0 + $0x7] ss:$8 sm:$0xf0]   ;;  %98 = vrot.lane.b32.xlu1 %v97_v2, %s869_s14  ;;  %v725_v27 = vld [vmem:[%s1606_s0 + $0x6] ss:$8 sm:$0xf0]  }
   0x5   :  { %v76_v5 = vsel %vm4_vm0, %v702_v4, %v701_v3  ;;  %v709_v6 = vld [vmem:[%s1606_s0 + $0x147] ss:$8 sm:$0xf]   ;;  %v163_v29 = vsel %vm4_vm0, %v725_v27, %v724_v26  ;;  %v732_v30 = vld [vmem:[%s1606_s0 + $0x146] ss:$8 sm:$0xf]  }
   0x6   :  { %v710_v7 = vld [vmem:[%s1606_s0 + $0x147] ss:$8 sm:$0xf0]   ;;  %77 = vrot.lane.b32.xlu0 %v76_v5, %s869_s14  ;;  %v733_v31 = vld [vmem:[%s1606_s0 + $0x146] ss:$8 sm:$0xf0]  }
   0x7   :  { %v108_v8 = vsel %vm4_vm0, %v710_v7, %v709_v6  ;;  %v703_v9 = vld [vmem:[%s1606_s0 + $0x107] ss:$8 sm:$0xf]   ;;  %v729_v32 = vld [vmem:[%s1606_s0 + $0x46] ss:$8 sm:$0xf]   ;;  %v195_v34 = vsel %vm4_vm0, %v733_v31, %v732_v30 }
   0x8   :  { %v704_v10 = vld [vmem:[%s1606_s0 + $0x107] ss:$8 sm:$0xf0]   ;;  %109 = vrot.lane.b32.xlu1 %v108_v8, %s869_s14  ;;  %v730_v33 = vld [vmem:[%s1606_s0 + $0x46] ss:$8 sm:$0xf0]  }
   0x9   :  { %v86_v11 = vsel %vm4_vm0, %v704_v10, %v703_v9  ;;  %v715_v12 = vld [vmem:[%s1606_s0 + $0x187] ss:$8 sm:$0xf]   ;;  %v184_v35 = vsel %vm4_vm0, %v730_v33, %v729_v32  ;;  %v738_v36 = vld [vmem:[%s1606_s0 + $0x186] ss:$8 sm:$0xf]  }
   0xa   :  { %v716_v13 = vld [vmem:[%s1606_s0 + $0x187] ss:$8 sm:$0xf0]   ;;  %87 = vrot.lane.b32.xlu0 %v86_v11, %s869_s14  ;;  %v739_v37 = vld [vmem:[%s1606_s0 + $0x186] ss:$8 sm:$0xf0]  }
   0xb   :  { %v712_v14 = vld [vmem:[%s1606_s0 + $0x87] ss:$8 sm:$0xf]   ;;  %v130_v16 = vsel %vm4_vm0, %v716_v13, %v715_v12  ;;  %v735_v38 = vld [vmem:[%s1606_s0 + $0x86] ss:$8 sm:$0xf]   ;;  %v217_v40 = vsel %vm4_vm0, %v739_v37, %v738_v36 }
   0xc   :  { %v713_v15 = vld [vmem:[%s1606_s0 + $0x87] ss:$8 sm:$0xf0]   ;;  %131 = vrot.lane.b32.xlu1 %v130_v16, %s869_s14  ;;  %v736_v39 = vld [vmem:[%s1606_s0 + $0x86] ss:$8 sm:$0xf0]  }
   0xd   :  { %v119_v17 = vsel %vm4_vm0, %v713_v15, %v712_v14  ;;  %v721_v18 = vld [vmem:[%s1606_s0 + $0x1c7] ss:$8 sm:$0xf]   ;;  %v206_v41 = vsel %vm4_vm0, %v736_v39, %v735_v38  ;;  %v744_v42 = vld [vmem:[%s1606_s0 + $0x1c6] ss:$8 sm:$0xf]  }
   0xe   :  { %v722_v19 = vld [vmem:[%s1606_s0 + $0x1c7] ss:$8 sm:$0xf0]   ;;  %120 = vrot.lane.b32.xlu0 %v119_v17, %s869_s14  ;;  %v745_v43 = vld [vmem:[%s1606_s0 + $0x1c6] ss:$8 sm:$0xf0]  }
   0xf   :  { %v718_v20 = vld [vmem:[%s1606_s0 + $0xc7] ss:$8 sm:$0xf]   ;;  %v152_v22 = vsel %vm4_vm0, %v722_v19, %v721_v18  ;;  %v741_v44 = vld [vmem:[%s1606_s0 + $0xc6] ss:$8 sm:$0xf]   ;;  %v239_v46 = vsel %vm4_vm0, %v745_v43, %v744_v42 }
  0x10   :  { %v719_v21 = vld [vmem:[%s1606_s0 + $0xc7] ss:$8 sm:$0xf0]   ;;  %153 = vrot.lane.b32.xlu1 %v152_v22, %s869_s14  ;;  %v742_v45 = vld [vmem:[%s1606_s0 + $0xc6] ss:$8 sm:$0xf0]  }
  0x11   :  { %v141_v23 = vsel %vm4_vm0, %v719_v21, %v718_v20  ;;  %v228_v47 = vsel %vm4_vm0, %v742_v45, %v741_v44  ;;  %v749_v48 = vld [vmem:[%s1606_s0 + $0x105] ss:$8 sm:$0xf]   ;;  %s871_s30 = smov 40   ;;  %s872_s5 = smov 32   ;;  %vm253_vm4 = vcmask 392512  }
  0x12   :  { %142 = vrot.lane.b32.xlu0 %v141_v23, %s869_s14  ;;  %v750_v49 = vld [vmem:[%s1606_s0 + $0x105] ss:$8 sm:$0xf0]   ;;  %v772_v8 = vld [vmem:[%s1606_s0 + $0x104] ss:$8 sm:$0xf]  }
  0x13   :  { %v747_v50 = vld [vmem:[%s1606_s0 + $0x5] ss:$8 sm:$0xf]   ;;  %v260_v52 = vsel %vm4_vm0, %v750_v49, %v749_v48  ;;  %v773_v9 = vld [vmem:[%s1606_s0 + $0x104] ss:$8 sm:$0xf0]  }
  0x14   :  { %174 = vrot.lane.b32.xlu1 %v173_v28, %s870_s26  ;;  %v748_v51 = vld [vmem:[%s1606_s0 + $0x5] ss:$8 sm:$0xf0]   ;;  %v770_v10 = vld [vmem:[%s1606_s0 + $0x4] ss:$8 sm:$0xf]   ;;  %v347_v12 = vsel %vm4_vm0, %v773_v9, %v772_v8 }
  0x15   :  { %v250_v53 = vsel %vm4_vm0, %v748_v51, %v747_v50  ;;  %v755_v54 = vld [vmem:[%s1606_s0 + $0x145] ss:$8 sm:$0xf]   ;;  %v771_v11 = vld [vmem:[%s1606_s0 + $0x4] ss:$8 sm:$0xf0]  }
  0x16   :  { %164 = vrot.lane.b32.xlu0 %v163_v29, %s870_s26  ;;  %v756_v55 = vld [vmem:[%s1606_s0 + $0x145] ss:$8 sm:$0xf0]   ;;  %v337_v13 = vsel %vm4_vm0, %v771_v11, %v770_v10  ;;  %v778_v14 = vld [vmem:[%s1606_s0 + $0x144] ss:$8 sm:$0xf]  }
  0x17   :  { %v752_v56 = vld [vmem:[%s1606_s0 + $0x45] ss:$8 sm:$0xf]   ;;  %v282_v58 = vsel %vm4_vm0, %v756_v55, %v755_v54  ;;  %v779_v15 = vld [vmem:[%s1606_s0 + $0x144] ss:$8 sm:$0xf0]  }
  0x18   :  { %196 = vrot.lane.b32.xlu1 %v195_v34, %s870_s26  ;;  %v753_v57 = vld [vmem:[%s1606_s0 + $0x45] ss:$8 sm:$0xf0]   ;;  %v775_v16 = vld [vmem:[%s1606_s0 + $0x44] ss:$8 sm:$0xf]   ;;  %v369_v18 = vsel %vm4_vm0, %v779_v15, %v778_v14 }
  0x19   :  { %v271_v59 = vsel %vm4_vm0, %v753_v57, %v752_v56  ;;  %v761_v60 = vld [vmem:[%s1606_s0 + $0x185] ss:$8 sm:$0xf]   ;;  %v776_v17 = vld [vmem:[%s1606_s0 + $0x44] ss:$8 sm:$0xf0]  }
  0x1a   :  { %185 = vrot.lane.b32.xlu0 %v184_v35, %s870_s26  ;;  %v762_v61 = vld [vmem:[%s1606_s0 + $0x185] ss:$8 sm:$0xf0]   ;;  %v358_v19 = vsel %vm4_vm0, %v776_v17, %v775_v16  ;;  %v784_v20 = vld [vmem:[%s1606_s0 + $0x184] ss:$8 sm:$0xf]  }
  0x1b   :  { %v758_v62 = vld [vmem:[%s1606_s0 + $0x85] ss:$8 sm:$0xf]   ;;  %v304_v0 = vsel %vm4_vm0, %v762_v61, %v761_v60  ;;  %v785_v21 = vld [vmem:[%s1606_s0 + $0x184] ss:$8 sm:$0xf0]  }
  0x1c   :  { %218 = vrot.lane.b32.xlu1 %v217_v40, %s870_s26  ;;  %v759_v63 = vld [vmem:[%s1606_s0 + $0x85] ss:$8 sm:$0xf0]   ;;  %v781_v22 = vld [vmem:[%s1606_s0 + $0x84] ss:$8 sm:$0xf]   ;;  %v391_v24 = vsel %vm4_vm0, %v785_v21, %v784_v20 }
  0x1d   :  { %v293_v1 = vsel %vm4_vm0, %v759_v63, %v758_v62  ;;  %v767_v2 = vld [vmem:[%s1606_s0 + $0x1c5] ss:$8 sm:$0xf]   ;;  %v782_v23 = vld [vmem:[%s1606_s0 + $0x84] ss:$8 sm:$0xf0]  }
  0x1e   :  { %207 = vrot.lane.b32.xlu0 %v206_v41, %s870_s26  ;;  %v768_v3 = vld [vmem:[%s1606_s0 + $0x1c5] ss:$8 sm:$0xf0]   ;;  %v790_v25 = vld [vmem:[%s1606_s0 + $0x1c4] ss:$8 sm:$0xf]   ;;  %v380_v27 = vsel %vm4_vm0, %v782_v23, %v781_v22 }
  0x1f   :  { %v764_v4 = vld [vmem:[%s1606_s0 + $0xc5] ss:$8 sm:$0xf]   ;;  %v326_v6 = vsel %vm4_vm0, %v768_v3, %v767_v2  ;;  %v791_v26 = vld [vmem:[%s1606_s0 + $0x1c4] ss:$8 sm:$0xf0]  }
  0x20   :  { %240 = vrot.lane.b32.xlu1 %v239_v46, %s870_s26  ;;  %v765_v5 = vld [vmem:[%s1606_s0 + $0xc5] ss:$8 sm:$0xf0]   ;;  %v787_v28 = vld [vmem:[%s1606_s0 + $0xc4] ss:$8 sm:$0xf]   ;;  %v413_v35 = vsel %vm4_vm0, %v791_v26, %v790_v25 }
  0x21   :  { %v315_v7 = vsel %vm4_vm0, %v765_v5, %v764_v4  ;;  %v788_v29 = vld [vmem:[%s1606_s0 + $0xc4] ss:$8 sm:$0xf0]   ;;  %v680_v30 = vld [vmem:[%s1606_s0 + $0x40] ss:$8 sm:$0xf]  }
  0x22   :  { %229 = vrot.lane.b32.xlu0 %v228_v47, %s870_s26  ;;  %v795_v31 = vld [vmem:[%s1606_s0 + $0x103] ss:$8 sm:$0xf]   ;;  %v681_v33 = vld [vmem:[%s1606_s0 + $0x40] ss:$8 sm:$0xf0]   ;;  %v402_v41 = vsel %vm4_vm0, %v788_v29, %v787_v28 }
  0x23   :  { %v796_v32 = vld [vmem:[%s1606_s0 + $0x103] ss:$8 sm:$0xf0]   ;;  %v2_v34 = vld [vmem:[%s1606_s0] ss:$8 sm:$0xf]   ;;  %v13_v38 = vsel %vm4_vm0, %v681_v33, %v680_v30 }
  0x24   :  { %261 = vrot.lane.b32.xlu1 %v260_v52, %s871_s30  ;;  %v793_v36 = vld [vmem:[%s1606_s0 + $0x3] ss:$8 sm:$0xf]   ;;  %v3_v39 = vld [vmem:[%s1606_s0] ss:$8 sm:$0xf0]  }
  0x25   :  { %v794_v37 = vld [vmem:[%s1606_s0 + $0x3] ss:$8 sm:$0xf0]   ;;  %v692_v40 = vld [vmem:[%s1606_s0 + $0x140] ss:$8 sm:$0xf]   ;;  %v5_v42 = vsel %vm4_vm0, %v3_v39, %v2_v34 }
  0x26   :  { %251 = vrot.lane.b32.xlu0 %v250_v53, %s871_s30  ;;  %682 = vst.msk [vmem:[%s1607_s1 + $0x8] sm:$0xff] %vm6_vm1, %v13_v38   ;;  %v693_v43 = vld [vmem:[%s1606_s0 + $0x140] ss:$8 sm:$0xf0]   ;;  %7 = vst.msk [vmem:[%s1607_s1] sm:$0xff] %vm6_vm1, %v5_v42   ;;  %v434_v53 = vsel %vm4_vm0, %v796_v32, %v795_v31  ;;  %s873_s25 = smov 24  }
  0x27   :  { %v689_v44 = vld [vmem:[%s1606_s0 + $0x100] ss:$8 sm:$0xf]   ;;  %v49_v45 = vsel %vm4_vm0, %v693_v43, %v692_v40  ;;  %v801_v48 = vld [vmem:[%s1606_s0 + $0x143] ss:$8 sm:$0xf]  }
  0x28   :  { %283 = vrot.lane.b32.xlu1 %v282_v58, %s871_s30  ;;  %v690_v46 = vld [vmem:[%s1606_s0 + $0x100] ss:$8 sm:$0xf0]   ;;  %v802_v49 = vld [vmem:[%s1606_s0 + $0x143] ss:$8 sm:$0xf0]   ;;  %v424_v58 = vsel %vm4_vm0, %v794_v37, %v793_v36 }
  0x29   :  { %v695_v47 = vld [vmem:[%s1606_s0 + $0x180] ss:$8 sm:$0xf]   ;;  %694 = vst.msk [vmem:[%s1607_s1 + $0x28] sm:$0xff] %vm6_vm1, %v49_v45   ;;  %v40_v50 = vsel %vm4_vm0, %v690_v46, %v689_v44  ;;  %v456_v2 = vsel %vm4_vm0, %v802_v49, %v801_v48  ;;  %s874_s4 = smov 16   ;;  %s875_s8 = smov 8  }
  0x2a   :  { %272 = vrot.lane.b32.xlu0 %v271_v59, %s871_s30  ;;  %v696_v51 = vld [vmem:[%s1606_s0 + $0x180] ss:$8 sm:$0xf0]   ;;  %v798_v54 = vld [vmem:[%s1606_s0 + $0x43] ss:$8 sm:$0xf]  }
  0x2b   :  { %v683_v52 = vld [vmem:[%s1606_s0 + $0x80] ss:$8 sm:$0xf]   ;;  %691 = vst.msk [vmem:[%s1607_s1 + $0x20] sm:$0xff] %vm6_vm1, %v40_v50   ;;  %v58_v55 = vsel %vm4_vm0, %v696_v51, %v695_v47  ;;  %vm340_vm5 = vcmask 326912   ;;  %vm427_vm6 = vcmask 261312  }
  0x2c   :  { %305 = vrot.lane.b32.xlu1 %v304_v0, %s871_s30  ;;  %v684_v56 = vld [vmem:[%s1606_s0 + $0x80] ss:$8 sm:$0xf0]   ;;  %697 = vst.msk [vmem:[%s1607_s1 + $0x30] sm:$0xff] %vm6_vm1, %v58_v55   ;;  %vm514_vm7 = vcmask 195712   ;;  %vm601_vm8 = vcmask 130112  }
  0x2d   :  { %v698_v57 = vld [vmem:[%s1606_s0 + $0x1c0] ss:$8 sm:$0xf]   ;;  %v22_v59 = vsel %vm4_vm0, %v684_v56, %v683_v52  ;;  %v799_v62 = vld [vmem:[%s1606_s0 + $0x43] ss:$8 sm:$0xf0]  }
  0x2e   :  { %294 = vrot.lane.b32.xlu0 %v293_v1, %s871_s30  ;;  %v699_v60 = vld [vmem:[%s1606_s0 + $0x1c0] ss:$8 sm:$0xf0]   ;;  %685 = vst.msk [vmem:[%s1607_s1 + $0x10] sm:$0xff] %vm6_vm1, %v22_v59   ;;  %v445_v3 = vsel %vm4_vm0, %v799_v62, %v798_v54 }
  0x2f   :  { %v686_v61 = vld [vmem:[%s1606_s0 + $0xc0] ss:$8 sm:$0xf]   ;;  %v67_v63 = vsel %vm4_vm0, %v699_v60, %v698_v57  ;;  %v807_v4 = vld [vmem:[%s1606_s0 + $0x183] ss:$8 sm:$0xf]  }
  0x30   :  { %327 = vrot.lane.b32.xlu1 %v326_v6, %s871_s30  ;;  %v687_v0 = vld [vmem:[%s1606_s0 + $0xc0] ss:$8 sm:$0xf0]   ;;  %700 = vst.msk [vmem:[%s1607_s1 + $0x38] sm:$0xff] %vm6_vm1, %v67_v63  }
  0x31   :  { %v31_v1 = vsel %vm4_vm0, %v687_v0, %v686_v61  ;;  %v808_v5 = vld [vmem:[%s1606_s0 + $0x183] ss:$8 sm:$0xf0]   ;;  %v818_v16 = vld [vmem:[%s1606_s0 + $0x102] ss:$8 sm:$0xf]  }
  0x32   :  { %316 = vrot.lane.b32.xlu0 %v315_v7, %s871_s30  ;;  %688 = vst.msk [vmem:[%s1607_s1 + $0x18] sm:$0xff] %vm6_vm1, %v31_v1   ;;  %v804_v6 = vld [vmem:[%s1606_s0 + $0x83] ss:$8 sm:$0xf]   ;;  %v478_v8 = vsel %vm4_vm0, %v808_v5, %v807_v4 }
  0x33   :  { %v805_v7 = vld [vmem:[%s1606_s0 + $0x83] ss:$8 sm:$0xf0]   ;;  %v819_v17 = vld [vmem:[%s1606_s0 + $0x102] ss:$8 sm:$0xf0]  }
  0x34   :  { %348 = vrot.lane.b32.xlu1 %v347_v12, %s872_s5  ;;  %v467_v9 = vsel %vm4_vm0, %v805_v7, %v804_v6  ;;  %v813_v10 = vld [vmem:[%s1606_s0 + $0x1c3] ss:$8 sm:$0xf]   ;;  %v521_v20 = vsel %vm4_vm0, %v819_v17, %v818_v16  ;;  %v824_v22 = vld [vmem:[%s1606_s0 + $0x142] ss:$8 sm:$0xf]  }
  0x35   :  { %v814_v11 = vld [vmem:[%s1606_s0 + $0x1c3] ss:$8 sm:$0xf0]   ;;  %v825_v23 = vld [vmem:[%s1606_s0 + $0x142] ss:$8 sm:$0xf0]  }
  0x36   :  { %338 = vrot.lane.b32.xlu0 %v337_v13, %s872_s5  ;;  %v810_v12 = vld [vmem:[%s1606_s0 + $0xc3] ss:$8 sm:$0xf]   ;;  %v500_v14 = vsel %vm4_vm0, %v814_v11, %v813_v10  ;;  %v822_v25 = vld [vmem:[%s1606_s0 + $0x42] ss:$8 sm:$0xf0]   ;;  %v543_v26 = vsel %vm4_vm0, %v825_v23, %v824_v22 }
  0x37   :  { %v811_v13 = vld [vmem:[%s1606_s0 + $0xc3] ss:$8 sm:$0xf0]   ;;  %v830_v28 = vld [vmem:[%s1606_s0 + $0x182] ss:$8 sm:$0xf]  }
  0x38   :  { %370 = vrot.lane.b32.xlu1 %v369_v18, %s872_s5  ;;  %v489_v15 = vsel %vm4_vm0, %v811_v13, %v810_v12  ;;  %v816_v18 = vld [vmem:[%s1606_s0 + $0x2] ss:$8 sm:$0xf]   ;;  %v841_v40 = vld [vmem:[%s1606_s0 + $0x101] ss:$8 sm:$0xf]  }
  0x39   :  { %v831_v29 = vld [vmem:[%s1606_s0 + $0x182] ss:$8 sm:$0xf0]   ;;  %v839_v42 = vld [vmem:[%s1606_s0 + $0x1] ss:$8 sm:$0xf]  }
  0x3a   :  { %359 = vrot.lane.b32.xlu0 %v358_v19, %s872_s5  ;;  %v817_v19 = vld [vmem:[%s1606_s0 + $0x2] ss:$8 sm:$0xf0]   ;;  %v565_v32 = vsel %vm4_vm0, %v831_v29, %v830_v28  ;;  %v840_v43 = vld [vmem:[%s1606_s0 + $0x1] ss:$8 sm:$0xf0]  }
  0x3b   :  { %v511_v21 = vsel %vm4_vm0, %v817_v19, %v816_v18  ;;  %v827_v30 = vld [vmem:[%s1606_s0 + $0x82] ss:$8 sm:$0xf]   ;;  %v598_v45 = vsel %vm4_vm0, %v840_v43, %v839_v42  ;;  %v847_v46 = vld [vmem:[%s1606_s0 + $0x141] ss:$8 sm:$0xf]  }
  0x3c   :  { %392 = vrot.lane.b32.xlu1 %v391_v24, %s872_s5  ;;  %v821_v24 = vld [vmem:[%s1606_s0 + $0x42] ss:$8 sm:$0xf]   ;;  %v848_v47 = vld [vmem:[%s1606_s0 + $0x141] ss:$8 sm:$0xf0]  }
  0x3d   :  { %v828_v31 = vld [vmem:[%s1606_s0 + $0x82] ss:$8 sm:$0xf0]   ;;  %v844_v48 = vld [vmem:[%s1606_s0 + $0x41] ss:$8 sm:$0xf]   ;;  %v630_v50 = vsel %vm4_vm0, %v848_v47, %v847_v46 }
  0x3e   :  { %381 = vrot.lane.b32.xlu0 %v380_v27, %s872_s5  ;;  %v532_v27 = vsel %vm4_vm0, %v822_v25, %v821_v24  ;;  %v554_v33 = vsel %vm4_vm0, %v828_v31, %v827_v30  ;;  %v836_v34 = vld [vmem:[%s1606_s0 + $0x1c2] ss:$8 sm:$0xf]   ;;  %v845_v49 = vld [vmem:[%s1606_s0 + $0x41] ss:$8 sm:$0xf0]  }
  0x3f   :  { %v833_v36 = vld [vmem:[%s1606_s0 + $0xc2] ss:$8 sm:$0xf]   ;;  %v619_v51 = vsel %vm4_vm0, %v845_v49, %v844_v48  ;;  %v853_v52 = vld [vmem:[%s1606_s0 + $0x181] ss:$8 sm:$0xf]  }
  0x40   :  { %414 = vrot.lane.b32.xlu1 %v413_v35, %s872_s5  ;;  %v837_v35 = vld [vmem:[%s1606_s0 + $0x1c2] ss:$8 sm:$0xf0]   ;;  %v850_v54 = vld [vmem:[%s1606_s0 + $0x81] ss:$8 sm:$0xf]  }
  0x41   :  { %v834_v37 = vld [vmem:[%s1606_s0 + $0xc2] ss:$8 sm:$0xf0]   ;;  %v587_v38 = vsel %vm4_vm0, %v837_v35, %v836_v34  ;;  %v851_v55 = vld [vmem:[%s1606_s0 + $0x81] ss:$8 sm:$0xf0]  }
  0x42   :  { %403 = vrot.lane.b32.xlu0 %v402_v41, %s872_s5  ;;  %v576_v39 = vsel %vm4_vm0, %v834_v37, %v833_v36  ;;  %v842_v41 = vld [vmem:[%s1606_s0 + $0x101] ss:$8 sm:$0xf0]   ;;  %v641_v57 = vsel %vm4_vm0, %v851_v55, %v850_v54 }
  0x43   :  { %v608_v44 = vsel %vm4_vm0, %v842_v41, %v841_v40  ;;  %v860_v59 = vld [vmem:[%s1606_s0 + $0x1c1] ss:$8 sm:$0xf0]  }
  0x44   :  { %435 = vrot.lane.b32.xlu1 %v434_v53, %s873_s25  ;;  %v854_v53 = vld [vmem:[%s1606_s0 + $0x181] ss:$8 sm:$0xf0]  }
  0x45   :  { %v652_v56 = vsel %vm4_vm0, %v854_v53, %v853_v52  ;;  %v856_v60 = vld [vmem:[%s1606_s0 + $0xc1] ss:$8 sm:$0xf]  }
  0x46   :  { %425 = vrot.lane.b32.xlu0 %v424_v58, %s873_s25  ;;  %v859_v58 = vld [vmem:[%s1606_s0 + $0x1c1] ss:$8 sm:$0xf]  }
  0x47   :  { %v857_v61 = vld [vmem:[%s1606_s0 + $0xc1] ss:$8 sm:$0xf0]   ;;  %v674_v62 = vsel %vm4_vm0, %v860_v59, %v859_v58 }
  0x48   :  { %457 = vrot.lane.b32.xlu1 %v456_v2, %s873_s25  ;;  %v663_v63 = vsel %vm4_vm0, %v857_v61, %v856_v60 }
  0x4a   :  { %446 = vrot.lane.b32.xlu0 %v445_v3, %s873_s25 }
  0x4c   :  { %479 = vrot.lane.b32.xlu1 %v478_v8, %s873_s25 }
  0x4e   :  { %468 = vrot.lane.b32.xlu0 %v467_v9, %s873_s25 }
  0x50   :  { %501 = vrot.lane.b32.xlu1 %v500_v14, %s873_s25 }
  0x52   :  { %490 = vrot.lane.b32.xlu0 %v489_v15, %s873_s25 }
  0x54   :  { %522 = vrot.lane.b32.xlu1 %v521_v20, %s874_s4 }
  0x56   :  { %512 = vrot.lane.b32.xlu0 %v511_v21, %s874_s4 }
  0x58   :  { %544 = vrot.lane.b32.xlu1 %v543_v26, %s874_s4 }
  0x5a   :  { %533 = vrot.lane.b32.xlu0 %v532_v27, %s874_s4 }
  0x5c   :  { %566 = vrot.lane.b32.xlu1 %v565_v32, %s874_s4 }
  0x5e   :  { %555 = vrot.lane.b32.xlu0 %v554_v33, %s874_s4 }
  0x60   :  { %588 = vrot.lane.b32.xlu1 %v587_v38, %s874_s4 }
  0x62   :  { %577 = vrot.lane.b32.xlu0 %v576_v39, %s874_s4 }
  0x64   :  { %609 = vrot.lane.b32.xlu1 %v608_v44, %s875_s8 }
  0x66   :  { %599 = vrot.lane.b32.xlu0 %v598_v45, %s875_s8 }
  0x68   :  { %631 = vrot.lane.b32.xlu1 %v630_v50, %s875_s8 }
  0x6a   :  { %620 = vrot.lane.b32.xlu0 %v619_v51, %s875_s8 }
  0x6c   :  { %653 = vrot.lane.b32.xlu1 %v652_v56, %s875_s8 }
  0x6e   :  { %642 = vrot.lane.b32.xlu0 %v641_v57, %s875_s8 }
  0x70   :  { %675 = vrot.lane.b32.xlu1 %v674_v62, %s875_s8 }
  0x72   :  { %664 = vrot.lane.b32.xlu0 %v663_v63, %s875_s8 }
  0x76   :  { %v99_v0 = vpop.permute.xlu1 %98  }
  0x77   :  { %708 = vst.msk [vmem:[%s1607_s1 + $0x8] sm:$0xff] %vm79_vm2, %v99_v0  }
  0x78   :  { %v78_v1 = vpop.permute.xlu0 %77  }
  0x79   :  { %80 = vst.msk [vmem:[%s1607_s1] sm:$0xff] %vm79_vm2, %v78_v1  }
  0x7a   :  { %v110_v2 = vpop.permute.xlu1 %109  }
  0x7b   :  { %711 = vst.msk [vmem:[%s1607_s1 + $0x28] sm:$0xff] %vm79_vm2, %v110_v2  }
  0x7c   :  { %v88_v3 = vpop.permute.xlu0 %87  }
  0x7d   :  { %705 = vst.msk [vmem:[%s1607_s1 + $0x20] sm:$0xff] %vm79_vm2, %v88_v3  }
  0x7e   :  { %v132_v4 = vpop.permute.xlu1 %131  }
  0x7f   :  { %717 = vst.msk [vmem:[%s1607_s1 + $0x30] sm:$0xff] %vm79_vm2, %v132_v4  }
  0x80   :  { %v121_v5 = vpop.permute.xlu0 %120  }
  0x81   :  { %714 = vst.msk [vmem:[%s1607_s1 + $0x10] sm:$0xff] %vm79_vm2, %v121_v5  }
  0x82   :  { %v154_v6 = vpop.permute.xlu1 %153  }
  0x83   :  { %723 = vst.msk [vmem:[%s1607_s1 + $0x38] sm:$0xff] %vm79_vm2, %v154_v6  }
  0x84   :  { %v143_v7 = vpop.permute.xlu0 %142  }
  0x85   :  { %720 = vst.msk [vmem:[%s1607_s1 + $0x18] sm:$0xff] %vm79_vm2, %v143_v7  }
  0x86   :  { %v175_v8 = vpop.permute.xlu1 %174  }
  0x87   :  { %728 = vst.msk [vmem:[%s1607_s1 + $0x20] sm:$0xff] %vm166_vm3, %v175_v8  }
  0x88   :  { %v165_v9 = vpop.permute.xlu0 %164  }
  0x89   :  { %167 = vst.msk [vmem:[%s1607_s1] sm:$0xff] %vm166_vm3, %v165_v9  }
  0x8a   :  { %v197_v10 = vpop.permute.xlu1 %196  }
  0x8b   :  { %734 = vst.msk [vmem:[%s1607_s1 + $0x28] sm:$0xff] %vm166_vm3, %v197_v10  }
  0x8c   :  { %v186_v11 = vpop.permute.xlu0 %185  }
  0x8d   :  { %731 = vst.msk [vmem:[%s1607_s1 + $0x8] sm:$0xff] %vm166_vm3, %v186_v11  }
  0x8e   :  { %v219_v12 = vpop.permute.xlu1 %218  }
  0x8f   :  { %740 = vst.msk [vmem:[%s1607_s1 + $0x30] sm:$0xff] %vm166_vm3, %v219_v12  }
  0x90   :  { %v208_v13 = vpop.permute.xlu0 %207  }
  0x91   :  { %737 = vst.msk [vmem:[%s1607_s1 + $0x10] sm:$0xff] %vm166_vm3, %v208_v13  }
  0x92   :  { %v241_v14 = vpop.permute.xlu1 %240  }
  0x93   :  { %746 = vst.msk [vmem:[%s1607_s1 + $0x38] sm:$0xff] %vm166_vm3, %v241_v14  }
  0x94   :  { %v230_v15 = vpop.permute.xlu0 %229  }
  0x95   :  { %743 = vst.msk [vmem:[%s1607_s1 + $0x18] sm:$0xff] %vm166_vm3, %v230_v15  }
  0x96   :  { %v262_v16 = vpop.permute.xlu1 %261  }
  0x97   :  { %751 = vst.msk [vmem:[%s1607_s1 + $0x20] sm:$0xff] %vm253_vm4, %v262_v16  }
  0x98   :  { %v252_v17 = vpop.permute.xlu0 %251  }
  0x99   :  { %254 = vst.msk [vmem:[%s1607_s1] sm:$0xff] %vm253_vm4, %v252_v17  }
  0x9a   :  { %v284_v18 = vpop.permute.xlu1 %283  }
  0x9b   :  { %757 = vst.msk [vmem:[%s1607_s1 + $0x28] sm:$0xff] %vm253_vm4, %v284_v18  }
  0x9c   :  { %v273_v19 = vpop.permute.xlu0 %272  }
  0x9d   :  { %754 = vst.msk [vmem:[%s1607_s1 + $0x8] sm:$0xff] %vm253_vm4, %v273_v19  }
  0x9e   :  { %v306_v20 = vpop.permute.xlu1 %305  }
  0x9f   :  { %763 = vst.msk [vmem:[%s1607_s1 + $0x30] sm:$0xff] %vm253_vm4, %v306_v20  }
  0xa0   :  { %v295_v21 = vpop.permute.xlu0 %294  }
  0xa1   :  { %760 = vst.msk [vmem:[%s1607_s1 + $0x10] sm:$0xff] %vm253_vm4, %v295_v21  }
  0xa2   :  { %v328_v22 = vpop.permute.xlu1 %327  }
  0xa3   :  { %769 = vst.msk [vmem:[%s1607_s1 + $0x38] sm:$0xff] %vm253_vm4, %v328_v22  }
  0xa4   :  { %v317_v23 = vpop.permute.xlu0 %316  }
  0xa5   :  { %766 = vst.msk [vmem:[%s1607_s1 + $0x18] sm:$0xff] %vm253_vm4, %v317_v23  }
  0xa6   :  { %v349_v24 = vpop.permute.xlu1 %348  }
  0xa7   :  { %774 = vst.msk [vmem:[%s1607_s1 + $0x20] sm:$0xff] %vm340_vm5, %v349_v24  }
  0xa8   :  { %v339_v25 = vpop.permute.xlu0 %338  }
  0xa9   :  { %341 = vst.msk [vmem:[%s1607_s1] sm:$0xff] %vm340_vm5, %v339_v25  }
  0xaa   :  { %v371_v26 = vpop.permute.xlu1 %370  }
  0xab   :  { %780 = vst.msk [vmem:[%s1607_s1 + $0x28] sm:$0xff] %vm340_vm5, %v371_v26  }
  0xac   :  { %v360_v27 = vpop.permute.xlu0 %359  }
  0xad   :  { %777 = vst.msk [vmem:[%s1607_s1 + $0x8] sm:$0xff] %vm340_vm5, %v360_v27  }
  0xae   :  { %v393_v28 = vpop.permute.xlu1 %392  }
  0xaf   :  { %786 = vst.msk [vmem:[%s1607_s1 + $0x30] sm:$0xff] %vm340_vm5, %v393_v28  }
  0xb0   :  { %v382_v29 = vpop.permute.xlu0 %381  }
  0xb1   :  { %783 = vst.msk [vmem:[%s1607_s1 + $0x10] sm:$0xff] %vm340_vm5, %v382_v29  }
  0xb2   :  { %v415_v30 = vpop.permute.xlu1 %414  }
  0xb3   :  { %792 = vst.msk [vmem:[%s1607_s1 + $0x38] sm:$0xff] %vm340_vm5, %v415_v30  }
  0xb4   :  { %v404_v31 = vpop.permute.xlu0 %403  }
  0xb5   :  { %789 = vst.msk [vmem:[%s1607_s1 + $0x18] sm:$0xff] %vm340_vm5, %v404_v31  }
  0xb6   :  { %v436_v32 = vpop.permute.xlu1 %435  }
  0xb7   :  { %797 = vst.msk [vmem:[%s1607_s1 + $0x20] sm:$0xff] %vm427_vm6, %v436_v32  }
  0xb8   :  { %v426_v33 = vpop.permute.xlu0 %425  }
  0xb9   :  { %428 = vst.msk [vmem:[%s1607_s1] sm:$0xff] %vm427_vm6, %v426_v33  }
  0xba   :  { %v458_v34 = vpop.permute.xlu1 %457  }
  0xbb   :  { %803 = vst.msk [vmem:[%s1607_s1 + $0x28] sm:$0xff] %vm427_vm6, %v458_v34  }
  0xbc   :  { %v447_v35 = vpop.permute.xlu0 %446  }
  0xbd   :  { %800 = vst.msk [vmem:[%s1607_s1 + $0x8] sm:$0xff] %vm427_vm6, %v447_v35  }
  0xbe   :  { %v480_v36 = vpop.permute.xlu1 %479  }
  0xbf   :  { %809 = vst.msk [vmem:[%s1607_s1 + $0x30] sm:$0xff] %vm427_vm6, %v480_v36  }
  0xc0   :  { %v469_v37 = vpop.permute.xlu0 %468  }
  0xc1   :  { %806 = vst.msk [vmem:[%s1607_s1 + $0x10] sm:$0xff] %vm427_vm6, %v469_v37  }
  0xc2   :  { %v502_v38 = vpop.permute.xlu1 %501  }
  0xc3   :  { %815 = vst.msk [vmem:[%s1607_s1 + $0x38] sm:$0xff] %vm427_vm6, %v502_v38  }
  0xc4   :  { %v491_v39 = vpop.permute.xlu0 %490  }
  0xc5   :  { %812 = vst.msk [vmem:[%s1607_s1 + $0x18] sm:$0xff] %vm427_vm6, %v491_v39  }
  0xc6   :  { %v523_v40 = vpop.permute.xlu1 %522  }
  0xc7   :  { %820 = vst.msk [vmem:[%s1607_s1 + $0x20] sm:$0xff] %vm514_vm7, %v523_v40  }
  0xc8   :  { %v513_v41 = vpop.permute.xlu0 %512  }
  0xc9   :  { %515 = vst.msk [vmem:[%s1607_s1] sm:$0xff] %vm514_vm7, %v513_v41  }
  0xca   :  { %v545_v42 = vpop.permute.xlu1 %544  }
  0xcb   :  { %826 = vst.msk [vmem:[%s1607_s1 + $0x28] sm:$0xff] %vm514_vm7, %v545_v42  }
  0xcc   :  { %v534_v43 = vpop.permute.xlu0 %533  }
  0xcd   :  { %823 = vst.msk [vmem:[%s1607_s1 + $0x8] sm:$0xff] %vm514_vm7, %v534_v43  }
  0xce   :  { %v567_v44 = vpop.permute.xlu1 %566  }
  0xcf   :  { %832 = vst.msk [vmem:[%s1607_s1 + $0x30] sm:$0xff] %vm514_vm7, %v567_v44  }
  0xd0   :  { %v556_v45 = vpop.permute.xlu0 %555  }
  0xd1   :  { %829 = vst.msk [vmem:[%s1607_s1 + $0x10] sm:$0xff] %vm514_vm7, %v556_v45  }
  0xd2   :  { %v589_v46 = vpop.permute.xlu1 %588  }
  0xd3   :  { %838 = vst.msk [vmem:[%s1607_s1 + $0x38] sm:$0xff] %vm514_vm7, %v589_v46  }
  0xd4   :  { %v578_v47 = vpop.permute.xlu0 %577  }
  0xd5   :  { %835 = vst.msk [vmem:[%s1607_s1 + $0x18] sm:$0xff] %vm514_vm7, %v578_v47  }
  0xd6   :  { %v610_v48 = vpop.permute.xlu1 %609  }
  0xd7   :  { %843 = vst.msk [vmem:[%s1607_s1 + $0x20] sm:$0xff] %vm601_vm8, %v610_v48  }
  0xd8   :  { %v600_v49 = vpop.permute.xlu0 %599  }
  0xd9   :  { %602 = vst.msk [vmem:[%s1607_s1] sm:$0xff] %vm601_vm8, %v600_v49  }
  0xda   :  { %v632_v50 = vpop.permute.xlu1 %631  }
  0xdb   :  { %849 = vst.msk [vmem:[%s1607_s1 + $0x28] sm:$0xff] %vm601_vm8, %v632_v50  }
  0xdc   :  { %v621_v51 = vpop.permute.xlu0 %620  }
  0xdd   :  { %846 = vst.msk [vmem:[%s1607_s1 + $0x8] sm:$0xff] %vm601_vm8, %v621_v51  }
  0xde   :  { %v654_v52 = vpop.permute.xlu1 %653  }
  0xdf   :  { %855 = vst.msk [vmem:[%s1607_s1 + $0x30] sm:$0xff] %vm601_vm8, %v654_v52  }
  0xe0   :  { %v643_v53 = vpop.permute.xlu0 %642  }
  0xe1   :  { %852 = vst.msk [vmem:[%s1607_s1 + $0x10] sm:$0xff] %vm601_vm8, %v643_v53  }
  0xe2   :  { %v676_v54 = vpop.permute.xlu1 %675  }
  0xe3   :  { %861 = vst.msk [vmem:[%s1607_s1 + $0x38] sm:$0xff] %vm601_vm8, %v676_v54  }
  0xe4   :  { %v665_v55 = vpop.permute.xlu0 %664  }
  0xe5   :  { %858 = vst.msk [vmem:[%s1607_s1 + $0x18] sm:$0xff] %vm601_vm8, %v665_v55  }

// kernel: aggregation_forward.1
= control target key start
LH: loop header
LB: loop body
LE: loop exit
PB: predicated region body
PF: predicated region fallthrough
CT: control target
= control target key end

     0   :  { %8 = vsyncpa [#allocation3], 0  ;;  %s801_s12 = smov 0   ;;  %s1034_s0 = inlined_call_operand.vmem [shape: bf16[256,256], index: 0, kind: input, shape index: {}]   ;;  %s1035_s1 = inlined_call_operand.vmem [shape: f32[20,64,128], index: 1, kind: input, shape index: {}]   ;;  %s1036_s2 = inlined_call_operand.vmem [shape: f32[20,8,128], index: 2, kind: input, shape index: {}]   ;;  %s1037_s3 = inlined_call_operand.hbm [shape: f32[20,8,8,128], index: 3, kind: output, shape index: {}]  }
   0x1 LB: > { %v702_v0 = vld [vmem:[%s1034_s0 + $0x4] ss:$8 sps:$4 sm:$0xff]   ;;  %s559_s15 = sshll.u32 %s776_s12, 8  ;;  %v700_v50 = vld [vmem:[%s1034_s0] ss:$8 sps:$4 sm:$0xff]   ;;  %s560_s4 = sshll.u32 %s776_s12, 5  ;;  %s776_s12 = sphi %s801_s12, %s21_s12  }
   0x2   : > { %v705_v1 = vld [vmem:[%s1034_s0 + $0x84] ss:$8 sps:$4 sm:$0xff]   ;;  %s818_s20 = scalar_lea.vmem %s1035_s1, %s559_s15  ;;  %297 = vmatprep.mubr.bf16.mxu0 %v702_v0  ;;  %v703_v51 = vld [vmem:[%s1034_s0 + $0x80] ss:$8 sps:$4 sm:$0xff]   ;;  %v706_v52 = vld [vmem:[%s1034_s0 + $0x14] ss:$8 sps:$4 sm:$0xff]   ;;  %s946_s7 = scalar_lea.vmem %s1036_s2, %s560_s4 }
   0x3   : > { %v55_v2 = vld [vmem:[%s818_s20 + $0xf0] sm:$0xff]  ;;  %v56_v3 = vld [vmem:[%s818_s20 + $0xf8] sm:$0xff]  ;;  %361 = vmatprep.mubr.bf16.mxu1 %v705_v1  ;;  %v53_v7 = vld [vmem:[%s818_s20 + $0xe0] sm:$0xff]  ;;  %s958_s8 = scalar_lea.vmem [#allocation2], %s559_s15  ;;  %s21_s12 = sadd.s32 1, %s776_s12  }
   0x4   : > { %v39_v4 = vld [vmem:[%s818_s20 + $0x70] sm:$0xff]  ;;  %v72_v5 = vpack.c.bf16 %v56_v3, %v55_v2  ;;  %v40_v6 = vld [vmem:[%s818_s20 + $0x78] sm:$0xff]  ;;  %v54_v8 = vld [vmem:[%s818_s20 + $0xe8] sm:$0xff]  ;;  %p18_p0 = scmp.ge.s32.totalorder %s21_s12, 5  }
   0x5   : > { %v64_v9 = vpack.c.bf16 %v40_v6, %v39_v4  ;;  %v71_v10 = vpack.c.bf16 %v54_v8, %v53_v7  ;;  %v37_v11 = vld [vmem:[%s818_s20 + $0x60] sm:$0xff]  ;;  %v38_v12 = vld [vmem:[%s818_s20 + $0x68] sm:$0xff]  ;;  %v51_v13 = vld [vmem:[%s818_s20 + $0xd0] sm:$0xff]  ;;  %s778_s15 = smov (%p18_p0), [#allocation2]  }
   0x6   : > { %561 = vmatprep.subr.bf16.mxu0 %v72_v5  ;;  %673 = vmatprep.subr.bf16.mxu1 %v72_v5  ;;  %v52_v14 = vld [vmem:[%s818_s20 + $0xd8] sm:$0xff]  ;;  %v63_v15 = vpack.c.bf16 %v38_v12, %v37_v11  ;;  %v35_v17 = vld [vmem:[%s818_s20 + $0x50] sm:$0xff]  ;;  %v49_v19 = vld [vmem:[%s818_s20 + $0xc0] sm:$0xff]  ;;  %s502_s9 = sshll.u32 (%p18_p0), %s778_s15, 4  ;;  %s503_s9 = int_to_ptr.vmem [resolvable:$true] %s502_s9 }
   0x7   : > { %562 = vmatpush3.bf16.msra.mxu0 %v64_v9  ;;  %681 = vmatpush3.bf16.msra.mxu1 %v64_v9  ;;  %v70_v16 = vpack.c.bf16 %v52_v14, %v51_v13  ;;  %v36_v18 = vld [vmem:[%s818_s20 + $0x58] sm:$0xff]  ;;  %v50_v20 = vld [vmem:[%s818_s20 + $0xc8] sm:$0xff]  ;;  %v33_v23 = vld [vmem:[%s818_s20 + $0x40] sm:$0xff]  ;;  %s748_s10 = scalar_lea.vmem (%p18_p0), %s503_s9, 20480  ;;  %p753_p2 = scmp.lt.s32.totalorder (%p18_p0), %s503_s9, %s503_s9 }
   0x8   : > { %563 = vmatprep.subr.bf16.mxu0 %v71_v10  ;;  %674 = vmatprep.subr.bf16.mxu1 %v71_v10  ;;  %v62_v21 = vpack.c.bf16 %v36_v18, %v35_v17  ;;  %v69_v22 = vpack.c.bf16 %v50_v20, %v49_v19  ;;  %v34_v24 = vld [vmem:[%s818_s20 + $0x48] sm:$0xff]  ;;  %v47_v25 = vld [vmem:[%s818_s20 + $0xb0] sm:$0xff]  ;;  %v48_v26 = vld [vmem:[%s818_s20 + $0xb8] sm:$0xff]  ;;  %p749_p1 = scmp.ne.s32.totalorder (%p18_p0), %s503_s9, %s748_s10  ;;  %p754_p3 = scmp.lt.s32.totalorder (%p18_p0), %s748_s10, %s748_s10 }
   0x9   : > { %v61_v27 = vpack.c.bf16 %v34_v24, %v33_v23  ;;  %v31_v28 = vld [vmem:[%s818_s20 + $0x30] sm:$0xff]  ;;  %v68_v29 = vpack.c.bf16 %v48_v26, %v47_v25  ;;  %v32_v30 = vld [vmem:[%s818_s20 + $0x38] sm:$0xff]  ;;  %v45_v31 = vld [vmem:[%s818_s20 + $0xa0] sm:$0xff] }
   0xa   : > { %v46_v32 = vld [vmem:[%s818_s20 + $0xa8] sm:$0xff]  ;;  %v60_v33 = vpack.c.bf16 %v32_v30, %v31_v28  ;;  %v29_v34 = vld [vmem:[%s818_s20 + $0x20] sm:$0xff]  ;;  %v43_v37 = vld [vmem:[%s818_s20 + $0x90] sm:$0xff]  ;;  %p755_p4 = por (%p18_p0), %p754_p3, %p753_p2 }
   0xb   : > { %564 = vmatpush3.bf16.msra.mxu0 %v63_v15  ;;  %682 = vmatpush3.bf16.msra.mxu1 %v63_v15  ;;  %v30_v35 = vld [vmem:[%s818_s20 + $0x28] sm:$0xff]  ;;  %v67_v36 = vpack.c.bf16 %v46_v32, %v45_v31  ;;  %v44_v38 = vld [vmem:[%s818_s20 + $0x98] sm:$0xff]  ;;  %v27_v40 = vld [vmem:[%s818_s20 + $0x10] sm:$0xff] }
   0xc   : > { %565 = vmatprep.subr.bf16.mxu0 %v70_v16  ;;  %675 = vmatprep.subr.bf16.mxu1 %v70_v16  ;;  %v59_v39 = vpack.c.bf16 %v30_v35, %v29_v34  ;;  %v66_v41 = vpack.c.bf16 %v44_v38, %v43_v37  ;;  %v28_v42 = vld [vmem:[%s818_s20 + $0x18] sm:$0xff]  ;;  %v41_v43 = vld [vmem:[%s818_s20 + $0x80] sm:$0xff]  ;;  %v42_v44 = vld [vmem:[%s818_s20 + $0x88] sm:$0xff]  ;;  %p756_p5 = pnand (%p18_p0), %p755_p4, %p749_p1 }
   0xd   : > { %v58_v45 = vpack.c.bf16 %v28_v42, %v27_v40  ;;  %v25_v46 = vld [vmem:[%s818_s20] sm:$0xff]  ;;  %v65_v47 = vpack.c.bf16 %v42_v44, %v41_v43  ;;  %v26_v48 = vld [vmem:[%s818_s20 + $0x8] sm:$0xff]  ;;  %v708_v53 = vld [vmem:[%s1034_s0 + $0x94] ss:$8 sps:$4 sm:$0xff]  }
   0xe   : > { %v57_v49 = vpack.c.bf16 %v26_v48, %v25_v46  ;;  %v710_v54 = vld [vmem:[%s1034_s0 + $0x10] ss:$8 sps:$4 sm:$0xff]   ;;  %v712_v56 = vld [vmem:[%s1034_s0 + $0x24] ss:$8 sps:$4 sm:$0xff]   ;;  %v716_v58 = vld [vmem:[%s1034_s0 + $0x20] ss:$8 sps:$4 sm:$0xff]  }
   0xf   : > { %566 = vmatpush3.bf16.msra.mxu0 %v62_v21  ;;  %683 = vmatpush3.bf16.msra.mxu1 %v62_v21  ;;  %v711_v55 = vld [vmem:[%s1034_s0 + $0x90] ss:$8 sps:$4 sm:$0xff]   ;;  %v714_v57 = vld [vmem:[%s1034_s0 + $0xa4] ss:$8 sps:$4 sm:$0xff]   ;;  %v717_v59 = vld [vmem:[%s1034_s0 + $0xa0] ss:$8 sps:$4 sm:$0xff]  }
  0x10   : > { %567 = vmatprep.subr.bf16.mxu0 %v69_v22  ;;  %676 = vmatprep.subr.bf16.mxu1 %v69_v22  ;;  %v718_v60 = vld [vmem:[%s1034_s0 + $0x34] ss:$8 sps:$4 sm:$0xff]   ;;  %v722_v62 = vld [vmem:[%s1034_s0 + $0x30] ss:$8 sps:$4 sm:$0xff]   ;;  %v724_v0 = vld [vmem:[%s1034_s0 + $0x44] ss:$8 sps:$4 sm:$0xff]  }
  0x11   : > { %v720_v61 = vld [vmem:[%s1034_s0 + $0xb4] ss:$8 sps:$4 sm:$0xff]   ;;  %v723_v63 = vld [vmem:[%s1034_s0 + $0xb0] ss:$8 sps:$4 sm:$0xff]   ;;  %v726_v1 = vld [vmem:[%s1034_s0 + $0xc4] ss:$8 sps:$4 sm:$0xff]  }
  0x12   : > { %v728_v2 = vld [vmem:[%s1034_s0 + $0x40] ss:$8 sps:$4 sm:$0xff]   ;;  %v730_v4 = vld [vmem:[%s1034_s0 + $0x54] ss:$8 sps:$4 sm:$0xff]   ;;  %v734_v6 = vld [vmem:[%s1034_s0 + $0x50] ss:$8 sps:$4 sm:$0xff]  }
  0x13   : > { %568 = vmatpush3.bf16.msra.mxu0 %v61_v27  ;;  %684 = vmatpush3.bf16.msra.mxu1 %v61_v27  ;;  %v729_v3 = vld [vmem:[%s1034_s0 + $0xc0] ss:$8 sps:$4 sm:$0xff]   ;;  %v732_v5 = vld [vmem:[%s1034_s0 + $0xd4] ss:$8 sps:$4 sm:$0xff]   ;;  %v735_v7 = vld [vmem:[%s1034_s0 + $0xd0] ss:$8 sps:$4 sm:$0xff]  }
  0x14   : > { %569 = vmatprep.subr.bf16.mxu0 %v68_v29  ;;  %677 = vmatprep.subr.bf16.mxu1 %v68_v29  ;;  %v736_v8 = vld [vmem:[%s1034_s0 + $0x64] ss:$8 sps:$4 sm:$0xff]   ;;  %v740_v10 = vld [vmem:[%s1034_s0 + $0x60] ss:$8 sps:$4 sm:$0xff]   ;;  %v742_v12 = vld [vmem:[%s1034_s0 + $0x74] ss:$8 sps:$4 sm:$0xff]  }
  0x15   : > { %v738_v9 = vld [vmem:[%s1034_s0 + $0xe4] ss:$8 sps:$4 sm:$0xff]   ;;  %v741_v11 = vld [vmem:[%s1034_s0 + $0xe0] ss:$8 sps:$4 sm:$0xff]   ;;  %v744_v13 = vld [vmem:[%s1034_s0 + $0xf4] ss:$8 sps:$4 sm:$0xff]  }
  0x16   : > { %v746_v14 = vld [vmem:[%s1034_s0 + $0x70] ss:$8 sps:$4 sm:$0xff]   ;;  %v949_v19 = vld [vmem:[%s946_s7] sm:$0xff] }
  0x17   : > { %570 = vmatpush3.bf16.msra.mxu0 %v60_v33  ;;  %685 = vmatpush3.bf16.msra.mxu1 %v60_v33  ;;  %v747_v15 = vld [vmem:[%s1034_s0 + $0xf0] ss:$8 sps:$4 sm:$0xff]  }
  0x18   : > { %571 = vmatprep.subr.bf16.mxu0 %v67_v36  ;;  %678 = vmatprep.subr.bf16.mxu1 %v67_v36  ;;  %v952_v21 = vld [vmem:[%s946_s7 + $0x10] sm:$0xff] }
  0x1b   : > { %572 = vmatpush3.bf16.msra.mxu0 %v59_v39  ;;  %686 = vmatpush3.bf16.msra.mxu1 %v59_v39 }
  0x1c   : > { %573 = vmatprep.subr.bf16.mxu0 %v66_v41  ;;  %679 = vmatprep.subr.bf16.mxu1 %v66_v41 }
  0x1f   : > { %574 = vmatpush3.bf16.msra.mxu0 %v58_v45  ;;  %687 = vmatpush3.bf16.msra.mxu1 %v58_v45 }
  0x20   : > { %575 = vmatprep.subr.bf16.mxu0 %v65_v47  ;;  %680 = vmatprep.subr.bf16.mxu1 %v65_v47 }
  0x23   : > { %576 = vmatpush3.bf16.msra.mxu0 %v57_v49  ;;  %688 = vmatpush3.bf16.msra.mxu1 %v57_v49 }
  0x26   : > { %298 = vmatmul.mubr.bf16.vlgmr.msra.gmra.mxu0 %v700_v50  ;;  %362 = vmatmul.mubr.bf16.vlgmr.msra.gmra.mxu1 %v703_v51 }
  0x27   : > { %305 = vmatprep.mubr.bf16.mxu0 %v706_v52  ;;  %369 = vmatprep.mubr.bf16.mxu1 %v708_v53 }
  0x2e   : > { %306 = vmatmul.mubr.bf16.gmra.mxu0 %v710_v54  ;;  %370 = vmatmul.mubr.bf16.gmra.mxu1 %v711_v55 }
  0x2f   : > { %313 = vmatprep.mubr.bf16.mxu0 %v712_v56  ;;  %377 = vmatprep.mubr.bf16.mxu1 %v714_v57 }
  0x36   : > { %314 = vmatmul.mubr.bf16.gmra.mxu0 %v716_v58  ;;  %378 = vmatmul.mubr.bf16.gmra.mxu1 %v717_v59 }
  0x37   : > { %321 = vmatprep.mubr.bf16.mxu0 %v718_v60  ;;  %385 = vmatprep.mubr.bf16.mxu1 %v720_v61 }
  0x3e   : > { %322 = vmatmul.mubr.bf16.gmra.mxu0 %v722_v62  ;;  %386 = vmatmul.mubr.bf16.gmra.mxu1 %v723_v63 }
  0x3f   : > { %329 = vmatprep.mubr.bf16.mxu0 %v724_v0  ;;  %393 = vmatprep.mubr.bf16.mxu1 %v726_v1 }
  0x46   : > { %330 = vmatmul.mubr.bf16.gmra.mxu0 %v728_v2  ;;  %394 = vmatmul.mubr.bf16.gmra.mxu1 %v729_v3 }
  0x47   : > { %337 = vmatprep.mubr.bf16.mxu0 %v730_v4  ;;  %401 = vmatprep.mubr.bf16.mxu1 %v732_v5 }
  0x4e   : > { %338 = vmatmul.mubr.bf16.gmra.mxu0 %v734_v6  ;;  %402 = vmatmul.mubr.bf16.gmra.mxu1 %v735_v7 }
  0x4f   : > { %345 = vmatprep.mubr.bf16.mxu0 %v736_v8  ;;  %409 = vmatprep.mubr.bf16.mxu1 %v738_v9 }
  0x56   : > { %346 = vmatmul.mubr.bf16.gmra.mxu0 %v740_v10  ;;  %410 = vmatmul.mubr.bf16.gmra.mxu1 %v741_v11 }
  0x57   : > { %353 = vmatprep.mubr.bf16.mxu0 %v742_v12  ;;  %417 = vmatprep.mubr.bf16.mxu1 %v744_v13 }
  0x5e   : > { %354 = vmatmul.mubr.bf16.gmra.mxu0 %v746_v14  ;;  %418 = vmatmul.mubr.bf16.gmra.mxu1 %v747_v15 }
  0xe6   : > { %v577_v16 = vpop.f32.mrf.mxu0  ;;  %v625_v17 = vpop.f32.mrf.mxu1 }
  0xe8   : > { %v578_v18 = vpop.f32.mrf.mxu0  ;;  %v626_v20 = vpop.f32.mrf.mxu1 }
  0xe9   : > { %v579_v22 = vadd.f32 %v578_v18, %v577_v16  ;;  %v627_v23 = vadd.f32 %v626_v20, %v625_v17 }
  0xea   : > { %v580_v24 = vpop.f32.mrf.mxu0  ;;  %v628_v25 = vpop.f32.mrf.mxu1 }
  0xeb   : > { %v432_v26 = vmul.f32 %v579_v22, %v949_v19  ;;  %v448_v27 = vmul.f32 %v627_v23, %v952_v21  ;;  %v989_v23 = vld [vmem:[%s946_s7 + $0x8] sm:$0xff] }
  0xec   : > { %v581_v28 = vpop.f32.mrf.mxu0  ;;  %v629_v29 = vpop.f32.mrf.mxu1 }
  0xed   : > { %465 = vst [vmem:[%s958_s8] sm:$0xff] %v432_v26  ;;  %481 = vst [vmem:[%s958_s8 + $0x80] sm:$0xff] %v448_v27  ;;  %v582_v30 = vadd.f32 %v581_v28, %v580_v24  ;;  %v630_v31 = vadd.f32 %v629_v29, %v628_v25  ;;  %v992_v25 = vld [vmem:[%s946_s7 + $0x18] sm:$0xff] }
  0xee   : > { %v583_v32 = vpop.f32.mrf.mxu0  ;;  %v631_v33 = vpop.f32.mrf.mxu1 }
  0xef   : > { %v433_v34 = vmul.f32 %v582_v30, %v949_v19  ;;  %v449_v35 = vmul.f32 %v630_v31, %v952_v21 }
  0xf0   : > { %v584_v36 = vpop.f32.mrf.mxu0  ;;  %v632_v37 = vpop.f32.mrf.mxu1 }
  0xf1   : > { %466 = vst [vmem:[%s958_s8 + $0x8] sm:$0xff] %v433_v34  ;;  %482 = vst [vmem:[%s958_s8 + $0x88] sm:$0xff] %v449_v35  ;;  %v585_v38 = vadd.f32 %v584_v36, %v583_v32  ;;  %v633_v39 = vadd.f32 %v632_v37, %v631_v33 }
  0xf2   : > { %v586_v40 = vpop.f32.mrf.mxu0  ;;  %v634_v41 = vpop.f32.mrf.mxu1 }
  0xf3   : > { %v434_v42 = vmul.f32 %v585_v38, %v949_v19  ;;  %v450_v43 = vmul.f32 %v633_v39, %v952_v21 }
  0xf4   : > { %v587_v44 = vpop.f32.mrf.mxu0  ;;  %v635_v45 = vpop.f32.mrf.mxu1 }
  0xf5   : > { %467 = vst [vmem:[%s958_s8 + $0x10] sm:$0xff] %v434_v42  ;;  %483 = vst [vmem:[%s958_s8 + $0x90] sm:$0xff] %v450_v43  ;;  %v588_v46 = vadd.f32 %v587_v44, %v586_v40  ;;  %v636_v47 = vadd.f32 %v635_v45, %v634_v41 }
  0xf6   : > { %v589_v48 = vpop.f32.mrf.mxu0  ;;  %v637_v49 = vpop.f32.mrf.mxu1 }
  0xf7   : > { %v435_v50 = vmul.f32 %v588_v46, %v949_v19  ;;  %v451_v51 = vmul.f32 %v636_v47, %v952_v21 }
  0xf8   : > { %v590_v52 = vpop.f32.mrf.mxu0  ;;  %v638_v53 = vpop.f32.mrf.mxu1 }
  0xf9   : > { %468 = vst [vmem:[%s958_s8 + $0x18] sm:$0xff] %v435_v50  ;;  %484 = vst [vmem:[%s958_s8 + $0x98] sm:$0xff] %v451_v51  ;;  %v591_v54 = vadd.f32 %v590_v52, %v589_v48  ;;  %v639_v55 = vadd.f32 %v638_v53, %v637_v49 }
  0xfa   : > { %v592_v56 = vpop.f32.mrf.mxu0  ;;  %v640_v57 = vpop.f32.mrf.mxu1 }
  0xfb   : > { %v436_v58 = vmul.f32 %v591_v54, %v949_v19  ;;  %v452_v59 = vmul.f32 %v639_v55, %v952_v21 }
  0xfc   : > { %v593_v60 = vpop.f32.mrf.mxu0  ;;  %v641_v61 = vpop.f32.mrf.mxu1 }
  0xfd   : > { %469 = vst [vmem:[%s958_s8 + $0x20] sm:$0xff] %v436_v58  ;;  %485 = vst [vmem:[%s958_s8 + $0xa0] sm:$0xff] %v452_v59  ;;  %v594_v62 = vadd.f32 %v593_v60, %v592_v56  ;;  %v642_v63 = vadd.f32 %v641_v61, %v640_v57 }
  0xfe   : > { %v595_v0 = vpop.f32.mrf.mxu0  ;;  %v643_v1 = vpop.f32.mrf.mxu1 }
  0xff   : > { %v437_v2 = vmul.f32 %v594_v62, %v949_v19  ;;  %v453_v3 = vmul.f32 %v642_v63, %v952_v21 }
 0x100   : > { %v596_v4 = vpop.f32.mrf.mxu0  ;;  %v644_v5 = vpop.f32.mrf.mxu1 }
 0x101   : > { %470 = vst [vmem:[%s958_s8 + $0x28] sm:$0xff] %v437_v2  ;;  %486 = vst [vmem:[%s958_s8 + $0xa8] sm:$0xff] %v453_v3  ;;  %v597_v6 = vadd.f32 %v596_v4, %v595_v0  ;;  %v645_v7 = vadd.f32 %v644_v5, %v643_v1 }
 0x102   : > { %v598_v8 = vpop.f32.mrf.mxu0  ;;  %v646_v9 = vpop.f32.mrf.mxu1 }
 0x103   : > { %v438_v10 = vmul.f32 %v597_v6, %v949_v19  ;;  %v454_v11 = vmul.f32 %v645_v7, %v952_v21 }
 0x104   : > { %v599_v12 = vpop.f32.mrf.mxu0  ;;  %v647_v13 = vpop.f32.mrf.mxu1 }
 0x105   : > { %471 = vst [vmem:[%s958_s8 + $0x30] sm:$0xff] %v438_v10  ;;  %487 = vst [vmem:[%s958_s8 + $0xb0] sm:$0xff] %v454_v11  ;;  %v600_v14 = vadd.f32 %v599_v12, %v598_v8  ;;  %v648_v15 = vadd.f32 %v647_v13, %v646_v9 }
 0x106   : > { %v601_v16 = vpop.f32.mrf.mxu0  ;;  %v649_v17 = vpop.f32.mrf.mxu1 }
 0x107   : > { %v439_v18 = vmul.f32 %v600_v14, %v949_v19  ;;  %v455_v20 = vmul.f32 %v648_v15, %v952_v21 }
 0x108   : > { %v602_v22 = vpop.f32.mrf.mxu0  ;;  %v650_v24 = vpop.f32.mrf.mxu1 }
 0x109   : > { %472 = vst [vmem:[%s958_s8 + $0x38] sm:$0xff] %v439_v18  ;;  %488 = vst [vmem:[%s958_s8 + $0xb8] sm:$0xff] %v455_v20  ;;  %v603_v26 = vadd.f32 %v602_v22, %v601_v16  ;;  %v651_v27 = vadd.f32 %v650_v24, %v649_v17 }
 0x10a   : > { %v604_v28 = vpop.f32.mrf.mxu0  ;;  %v652_v29 = vpop.f32.mrf.mxu1 }
 0x10b   : > { %v440_v19 = vmul.f32 %v603_v26, %v989_v23  ;;  %v456_v30 = vmul.f32 %v651_v27, %v992_v25 }
 0x10c   : > { %v605_v21 = vpop.f32.mrf.mxu0  ;;  %v653_v31 = vpop.f32.mrf.mxu1 }
 0x10d   : > { %473 = vst [vmem:[%s958_s8 + $0x40] sm:$0xff] %v440_v19  ;;  %489 = vst [vmem:[%s958_s8 + $0xc0] sm:$0xff] %v456_v30  ;;  %v606_v32 = vadd.f32 %v605_v21, %v604_v28  ;;  %v654_v33 = vadd.f32 %v653_v31, %v652_v29 }
 0x10e   : > { %v607_v34 = vpop.f32.mrf.mxu0  ;;  %v655_v35 = vpop.f32.mrf.mxu1 }
 0x10f   : > { %v441_v36 = vmul.f32 %v606_v32, %v989_v23  ;;  %v457_v37 = vmul.f32 %v654_v33, %v992_v25 }
 0x110   : > { %v608_v38 = vpop.f32.mrf.mxu0  ;;  %v656_v39 = vpop.f32.mrf.mxu1 }
 0x111   : > { %474 = vst [vmem:[%s958_s8 + $0x48] sm:$0xff] %v441_v36  ;;  %490 = vst [vmem:[%s958_s8 + $0xc8] sm:$0xff] %v457_v37  ;;  %v609_v40 = vadd.f32 %v608_v38, %v607_v34  ;;  %v657_v41 = vadd.f32 %v656_v39, %v655_v35 }
 0x112   : > { %v610_v42 = vpop.f32.mrf.mxu0  ;;  %v658_v43 = vpop.f32.mrf.mxu1 }
 0x113   : > { %v442_v44 = vmul.f32 %v609_v40, %v989_v23  ;;  %v458_v45 = vmul.f32 %v657_v41, %v992_v25 }
 0x114   : > { %v611_v46 = vpop.f32.mrf.mxu0  ;;  %v659_v47 = vpop.f32.mrf.mxu1 }
 0x115   : > { %475 = vst [vmem:[%s958_s8 + $0x50] sm:$0xff] %v442_v44  ;;  %491 = vst [vmem:[%s958_s8 + $0xd0] sm:$0xff] %v458_v45  ;;  %v612_v48 = vadd.f32 %v611_v46, %v610_v42  ;;  %v660_v49 = vadd.f32 %v659_v47, %v658_v43 }
 0x116   : > { %v613_v50 = vpop.f32.mrf.mxu0  ;;  %v661_v51 = vpop.f32.mrf.mxu1 }
 0x117   : > { %v443_v52 = vmul.f32 %v612_v48, %v989_v23  ;;  %v459_v53 = vmul.f32 %v660_v49, %v992_v25 }
 0x118   : > { %v614_v54 = vpop.f32.mrf.mxu0  ;;  %v662_v55 = vpop.f32.mrf.mxu1 }
 0x119   : > { %476 = vst [vmem:[%s958_s8 + $0x58] sm:$0xff] %v443_v52  ;;  %492 = vst [vmem:[%s958_s8 + $0xd8] sm:$0xff] %v459_v53  ;;  %v615_v56 = vadd.f32 %v614_v54, %v613_v50  ;;  %v663_v57 = vadd.f32 %v662_v55, %v661_v51 }
 0x11a   : > { %v616_v58 = vpop.f32.mrf.mxu0  ;;  %v664_v59 = vpop.f32.mrf.mxu1 }
 0x11b   : > { %v444_v60 = vmul.f32 %v615_v56, %v989_v23  ;;  %v460_v61 = vmul.f32 %v663_v57, %v992_v25 }
 0x11c   : > { %v617_v62 = vpop.f32.mrf.mxu0  ;;  %v665_v63 = vpop.f32.mrf.mxu1 }
 0x11d   : > { %477 = vst [vmem:[%s958_s8 + $0x60] sm:$0xff] %v444_v60  ;;  %493 = vst [vmem:[%s958_s8 + $0xe0] sm:$0xff] %v460_v61  ;;  %v618_v0 = vadd.f32 %v617_v62, %v616_v58  ;;  %v666_v1 = vadd.f32 %v665_v63, %v664_v59 }
 0x11e   : > { %v619_v2 = vpop.f32.mrf.mxu0  ;;  %v667_v3 = vpop.f32.mrf.mxu1 }
 0x11f   : > { %v445_v4 = vmul.f32 %v618_v0, %v989_v23  ;;  %v461_v5 = vmul.f32 %v666_v1, %v992_v25 }
 0x120   : > { %v620_v6 = vpop.f32.mrf.mxu0  ;;  %v668_v7 = vpop.f32.mrf.mxu1 }
 0x121   : > { %478 = vst [vmem:[%s958_s8 + $0x68] sm:$0xff] %v445_v4  ;;  %494 = vst [vmem:[%s958_s8 + $0xe8] sm:$0xff] %v461_v5  ;;  %v621_v8 = vadd.f32 %v620_v6, %v619_v2  ;;  %v669_v9 = vadd.f32 %v668_v7, %v667_v3 }
 0x122   : > { %v622_v10 = vpop.f32.mrf.mxu0  ;;  %v670_v11 = vpop.f32.mrf.mxu1 }
 0x123   : > { %v446_v12 = vmul.f32 %v621_v8, %v989_v23  ;;  %v462_v13 = vmul.f32 %v669_v9, %v992_v25 }
 0x124   : > { %v623_v14 = vpop.f32.mrf.mxu0  ;;  %v671_v15 = vpop.f32.mrf.mxu1 }
 0x125   : > { %479 = vst [vmem:[%s958_s8 + $0x70] sm:$0xff] %v446_v12  ;;  %495 = vst [vmem:[%s958_s8 + $0xf0] sm:$0xff] %v462_v13  ;;  %v624_v16 = vadd.f32 %v623_v14, %v622_v10  ;;  %v672_v17 = vadd.f32 %v671_v15, %v670_v11  ;;  %20 = sbr.rel (!%p18_p0) target bundleno = 1 (0x1), region = 42 }
 0x127   : > { %v447_v18 = vmul.f32 %v624_v16, %v989_v23  ;;  %v463_v20 = vmul.f32 %v672_v17, %v992_v25 }
 0x129   : > { %480 = vst [vmem:[%s958_s8 + $0x78] sm:$0xff] %v447_v18  ;;  %496 = vst [vmem:[%s958_s8 + $0xf8] sm:$0xff] %v463_v20 }
 0x12a   :  { %759 = shalt.err (!%p756_p5)
}
 0x12b   :  { %s779_s11 = smov 128   ;;  %s780_s13 = smov 8  }
 0x12c   :  { %508 = dma.vmem_to_hbm [thread:$0]  %s503_s9, 20480, %s1037_s3, [#allocation3], %s779_s11, %s779_s11, %s780_s13  }
 0x12d   :  { %772 = dma.done.wait [#allocation3], 20480  }
 0x12e   :  { %773 = vsyncadd [#allocation3], 4294946816 }
 0x12f   :  { %512 = vsyncpa [#allocation3], 1 }

</bundles_post_ra>
